<compile_context>
chip_gen: v5e
topology: v5e:2x2
jax: 0.10.0
libtpu: 0.0.40
codegen_flags: <defaults>
</compile_context>

<pallas_src>
import jax
import jax.numpy as jnp
from jax.experimental import pallas as pl
from jax.experimental.pallas import tpu as pltpu


def _round_up(x, m):
    return ((int(x) + m - 1) // m) * m


def _ssnet_kernel(x_ref, w1_ref, b1_ref, w2_ref, b2_ref, w3_ref, b3_ref, o_ref):
    # x_ref block: (Cin, TL)  (batch dim squeezed away by the BlockSpec)
    x = x_ref[...]
    if x.dtype != jnp.bfloat16:          # no-op when caller supplies bf16
        x = x.astype(jnp.bfloat16)

    # layer 0: Conv1d(Cin -> 32, k=1) + ReLU  (bf16 MXU operands, f32 accumulate)
    h = jnp.dot(w1_ref[...], x, preferred_element_type=jnp.float32) + b1_ref[...]
    h = jnp.maximum(h, 0.0).astype(jnp.bfloat16)   # single bf16 materialization

    # layer 1: Conv1d(32 -> 32, k=1) + ReLU
    h = jnp.dot(w2_ref[...], h, preferred_element_type=jnp.float32) + b2_ref[...]
    h = jnp.maximum(h, 0.0).astype(jnp.bfloat16)

    # output layer: Conv1d(32 -> 3, k=1), no activation
    o = jnp.dot(w3_ref[...], h, preferred_element_type=jnp.float32) + b3_ref[...]
    o_ref[...] = o.astype(o_ref.dtype)


def _chip_defaults():
    """Per-generation (tile_points, vmem_limit_bytes), keyed off physical VMEM."""
    try:
        vmem = int(pltpu.get_tpu_info().vmem_capacity_bytes)
    except Exception:
        vmem = None
    if vmem is not None and vmem > (96 << 20):
        # v5e / v6e: 128 MiB VMEM -> large tiles to amortize per-step overhead
        # and get long strided DMA bursts.
        return 32768, 100 << 20
    # v7x-like (64 MiB VMEM per TC) or unknown: conservative, keep
    # double-buffering alive.
    return 16384, 48 << 20


def larmatch_ssnet_classifier(x, params, *, tl=None, out_dtype=jnp.float32,
                              vmem_limit_bytes=None):
    """x: (N, Cin, L) float32 or bfloat16; returns (N, 3, L) `out_dtype` logits
    (== the PyTorch Conv1d/ReLU stack).

    tl: point-axis tile size (lane-dense, rounded to a multiple of 128).
        Default is picked per chip generation (32768 on 128-MiB-VMEM chips,
        16384 on 64-MiB-VMEM chips).
    Passing x as bfloat16 halves the dominant HBM read traffic (recommended).
    """
    n, cin, length = x.shape
    w1, b1, w2, b2, w3, b3 = params
    nmid1 = w1.shape[0]
    nmid2 = w2.shape[0]
    nout = w3.shape[0]

    default_tl, default_vmem = _chip_defaults()
    if tl is None:
        tl = default_tl
    if vmem_limit_bytes is None:
        vmem_limit_bytes = default_vmem

    # Lane-dense L tile: multiple of 128, no larger than L rounded up to 128.
    tl = min(int(tl), _round_up(length, 128))
    tl = max(128, _round_up(tl, 128))
    if n == 1:
        # Guarantee >= 2 L tiles so a 2-TensorCore chip (v7x) can shard the
        # parallel grid even for a single batch element.
        tl = min(tl, max(128, _round_up(pl.cdiv(length, 2), 128)))

    num_l_tiles = pl.cdiv(length, tl)   # ragged last tile handled by Pallas

    # bf16 weights for the MXU; biases stay f32 for the VPU epilogue.
    w1b = w1.astype(jnp.bfloat16)
    w2b = w2.astype(jnp.bfloat16)
    w3b = w3.astype(jnp.bfloat16)
    b1f = b1.astype(jnp.float32)
    b2f = b2.astype(jnp.float32)
    b3f = b3.astype(jnp.float32)

    # L tiles lead the grid so the megacore-sharded axis always has extent > 1
    # for the typical N == 1 LArMatch call.
    grid = (num_l_tiles, n)

    def _rep(shape):
        # small weight/bias blocks: full array, same block for every grid step
        # (constant index_map -> fetched once, resident across the grid).
        return pl.BlockSpec(shape, lambda j, i: tuple(0 for _ in shape))

    out = pl.pallas_call(
        _ssnet_kernel,
        out_shape=jax.ShapeDtypeStruct((n, nout, length), out_dtype),
        grid_spec=pltpu.PrefetchScalarGridSpec(
            num_scalar_prefetch=0,
            grid=grid,
            in_specs=[
                # x: one batch element, one L tile; batch dim squeezed
                pl.BlockSpec((pl.Squeezed(), cin, tl), lambda j, i: (i, 0, j)),
                _rep((nmid1, cin)),    # w1
                _rep((nmid1, 1)),      # b1
                _rep((nmid2, nmid1)),  # w2
                _rep((nmid2, 1)),      # b2
                _rep((nout, nmid2)),   # w3
                _rep((nout, 1)),       # b3
            ],
            out_specs=pl.BlockSpec((pl.Squeezed(), nout, tl),
                                   lambda j, i: (i, 0, j)),
        ),
        compiler_params=pltpu.CompilerParams(
            # no reduction axis -> both axes parallel (sharded across 2 TCs on v7x)
            dimension_semantics=("parallel", "parallel"),
            vmem_limit_bytes=vmem_limit_bytes,
        ),
    )(x, w1b, b1f, w2b, b2f, w3b, b3f)
    return out


def init_params(key, features_per_layer=16, nfeatures=(32, 32), ninput_planes=3):
    """Deterministic synthetic init matching the PyTorch module's parameter shapes.
    Conv1d weights with kernel_size=1 -> stored here as (Cout, Cin)."""
    cin = ninput_planes * features_per_layer          # 48
    c0, c1 = nfeatures                                 # 32, 32
    keys = jax.random.split(key, 6)

    def u(k, shape, fan_in):
        bound = 1.0 / jnp.sqrt(fan_in)                 # PyTorch Conv1d default init range
        return jax.random.uniform(k, shape, jnp.float32, -bound, bound)

    w1 = u(keys[0], (c0, cin), cin)
    b1 = u(keys[1], (c0, 1), cin)
    w2 = u(keys[2], (c1, c0), c0)
    b2 = u(keys[3], (c1, 1), c0)
    w3 = u(keys[4], (3, c1), c1)
    b3 = u(keys[5], (3, 1), c1)
    return (w1, b1, w2, b2, w3, b3)


def _reference(x, params):
    """Pure-JAX (f32) reference of the 1x1-conv stack."""
    w1, b1, w2, b2, w3, b3 = params
    h = jnp.maximum(jnp.einsum("oc,ncl->nol", w1, x) + b1[None], 0.0)
    h = jnp.maximum(jnp.einsum("oc,ncl->nol", w2, h) + b2[None], 0.0)
    return jnp.einsum("oc,ncl->nol", w3, h) + b3[None]


if __name__ == "__main__":
    key = jax.random.PRNGKey(0)
    kx, kp = jax.random.split(key)

    N, FEAT_PER_LAYER, NPLANES, L = 2, 16, 3, 384
    CIN = NPLANES * FEAT_PER_LAYER                     # 48

    x = jax.random.normal(kx, (N, CIN, L), jnp.float32)
    params = init_params(kp, FEAT_PER_LAYER, (32, 32), NPLANES)
    ref = _reference(x, params)

    # 1) f32 input, per-generation default tile (clamps to one L tile here)
    out = jax.block_until_ready(larmatch_ssnet_classifier(x, params))
    assert out.shape == (N, 3, L), out.shape
    assert jnp.allclose(out, ref, atol=2e-2, rtol=2e-2), "mismatch (f32 input)"

    # 2) bf16 input (HBM-traffic-optimized caller contract) + explicit small
    #    tile -> exercises the tiled grid with a ragged (but 128-aligned) edge
    x_bf16 = x.astype(jnp.bfloat16)
    out_bf = jax.block_until_ready(larmatch_ssnet_classifier(x_bf16, params, tl=256))
    assert out_bf.shape == (N, 3, L), out_bf.shape
    assert jnp.allclose(out_bf, ref, atol=5e-2, rtol=5e-2), "mismatch (bf16 input)"

    # 3) L not a multiple of 128 -> exercises masked writes on the partial
    #    last L tile (no jnp.pad / output slice anywhere in the wrapper)
    L_RAG = 333
    x_rag = x[:, :, :L_RAG]
    out_rag = jax.block_until_ready(larmatch_ssnet_classifier(x_rag, params, tl=256))
    assert out_rag.shape == (N, 3, L_RAG), out_rag.shape
    assert jnp.allclose(out_rag, ref[:, :, :L_RAG], atol=2e-2, rtol=2e-2), \
        "mismatch (ragged L)"

    # 4) bf16 logits (optional writeback-halving output dtype)
    out_b16 = jax.block_until_ready(
        larmatch_ssnet_classifier(x, params, out_dtype=jnp.bfloat16))
    assert out_b16.dtype == jnp.bfloat16
    assert jnp.allclose(out_b16.astype(jnp.float32), ref, atol=5e-2, rtol=5e-2), \
        "mismatch (bf16 logits)"

    print("KERNEL_OK")
</pallas_src>

<mosaic_0001>
module attributes {stable_mosaic.version = 11 : i64} {
  func.func @_ssnet_kernel(%arg0: i32, %arg1: i32, %arg2: memref<1x48x384xf32, #tpu.memory_space<vmem>>, %arg3: memref<32x48xbf16, #tpu.memory_space<vmem>>, %arg4: memref<32x1xf32, #tpu.memory_space<vmem>>, %arg5: memref<32x32xbf16, #tpu.memory_space<vmem>>, %arg6: memref<32x1xf32, #tpu.memory_space<vmem>>, %arg7: memref<3x32xbf16, #tpu.memory_space<vmem>>, %arg8: memref<3x1xf32, #tpu.memory_space<vmem>>, %arg9: memref<1x3x384xf32, #tpu.memory_space<vmem>>) attributes {dimension_semantics = [#tpu.dimension_semantics<parallel>, #tpu.dimension_semantics<parallel>], iteration_bounds = array<i64: 1, 2>, scalar_prefetch = 0 : i64, scratch_operands = 0 : i64, tpu.core_type = #tpu.core_type<tc>, window_params = [{transform_indices = @transform_0, window_bounds = array<i64: 1, 48, 384>}, {pipeline_mode = #tpu.pipeline_mode<synchronous>, transform_indices = @transform_1, window_bounds = array<i64: 32, 48>}, {pipeline_mode = #tpu.pipeline_mode<synchronous>, transform_indices = @transform_2, window_bounds = array<i64: 32, 1>}, {pipeline_mode = #tpu.pipeline_mode<synchronous>, transform_indices = @transform_3, window_bounds = array<i64: 32, 32>}, {pipeline_mode = #tpu.pipeline_mode<synchronous>, transform_indices = @transform_4, window_bounds = array<i64: 32, 1>}, {pipeline_mode = #tpu.pipeline_mode<synchronous>, transform_indices = @transform_5, window_bounds = array<i64: 3, 32>}, {pipeline_mode = #tpu.pipeline_mode<synchronous>, transform_indices = @transform_6, window_bounds = array<i64: 3, 1>}, {transform_indices = @transform_7, window_bounds = array<i64: 1, 3, 384>}]} {
    %c0 = arith.constant 0 : index
    %c0_0 = arith.constant 0 : index
    %c0_1 = arith.constant 0 : index
    %0 = vector.load %arg2[%c0, %c0_0, %c0_1] : memref<1x48x384xf32, #tpu.memory_space<vmem>>, vector<1x48x384xf32>
    %1 = vector.shape_cast %0 : vector<1x48x384xf32> to vector<48x384xf32>
    %2 = arith.truncf %1 : vector<48x384xf32> to vector<48x384xbf16>
    %c0_2 = arith.constant 0 : index
    %c0_3 = arith.constant 0 : index
    %3 = vector.load %arg3[%c0_2, %c0_3] : memref<32x48xbf16, #tpu.memory_space<vmem>>, vector<32x48xbf16>
    %cst = arith.constant dense<0.000000e+00> : vector<32x384xf32>
    %4 = tpu.matmul %3, %2, %cst {dimension_numbers = #tpu.dot_dimension_numbers<[1], [0], [0], [1], [0, 0, 1, 1], [], []>} : vector<32x48xbf16>, vector<48x384xbf16>, vector<32x384xf32> -> vector<32x384xf32>
    %c0_4 = arith.constant 0 : index
    %c0_5 = arith.constant 0 : index
    %5 = vector.load %arg4[%c0_4, %c0_5] : memref<32x1xf32, #tpu.memory_space<vmem>>, vector<32x1xf32>
    %6 = vector.broadcast %5 : vector<32x1xf32> to vector<32x384xf32>
    %7 = arith.addf %4, %6 : vector<32x384xf32>
    %cst_6 = arith.constant 0.000000e+00 : f32
    %8 = vector.broadcast %cst_6 : f32 to vector<32x384xf32>
    %9 = arith.maximumf %7, %8 : vector<32x384xf32>
    %10 = arith.truncf %9 : vector<32x384xf32> to vector<32x384xbf16>
    %c0_7 = arith.constant 0 : index
    %c0_8 = arith.constant 0 : index
    %11 = vector.load %arg5[%c0_7, %c0_8] : memref<32x32xbf16, #tpu.memory_space<vmem>>, vector<32x32xbf16>
    %cst_9 = arith.constant dense<0.000000e+00> : vector<32x384xf32>
    %12 = tpu.matmul %11, %10, %cst_9 {dimension_numbers = #tpu.dot_dimension_numbers<[1], [0], [0], [1], [0, 0, 1, 1], [], []>} : vector<32x32xbf16>, vector<32x384xbf16>, vector<32x384xf32> -> vector<32x384xf32>
    %c0_10 = arith.constant 0 : index
    %c0_11 = arith.constant 0 : index
    %13 = vector.load %arg6[%c0_10, %c0_11] : memref<32x1xf32, #tpu.memory_space<vmem>>, vector<32x1xf32>
    %14 = vector.broadcast %13 : vector<32x1xf32> to vector<32x384xf32>
    %15 = arith.addf %12, %14 : vector<32x384xf32>
    %cst_12 = arith.constant 0.000000e+00 : f32
    %16 = vector.broadcast %cst_12 : f32 to vector<32x384xf32>
    %17 = arith.maximumf %15, %16 : vector<32x384xf32>
    %18 = arith.truncf %17 : vector<32x384xf32> to vector<32x384xbf16>
    %c0_13 = arith.constant 0 : index
    %c0_14 = arith.constant 0 : index
    %19 = vector.load %arg7[%c0_13, %c0_14] : memref<3x32xbf16, #tpu.memory_space<vmem>>, vector<3x32xbf16>
    %cst_15 = arith.constant dense<0.000000e+00> : vector<3x384xf32>
    %20 = tpu.matmul %19, %18, %cst_15 {dimension_numbers = #tpu.dot_dimension_numbers<[1], [0], [0], [1], [0, 0, 1, 1], [], []>} : vector<3x32xbf16>, vector<32x384xbf16>, vector<3x384xf32> -> vector<3x384xf32>
    %c0_16 = arith.constant 0 : index
    %c0_17 = arith.constant 0 : index
    %21 = vector.load %arg8[%c0_16, %c0_17] : memref<3x1xf32, #tpu.memory_space<vmem>>, vector<3x1xf32>
    %22 = vector.broadcast %21 : vector<3x1xf32> to vector<3x384xf32>
    %23 = arith.addf %20, %22 : vector<3x384xf32>
    %c0_18 = arith.constant 0 : index
    %c0_19 = arith.constant 0 : index
    %c0_20 = arith.constant 0 : index
    %24 = vector.load %arg9[%c0_18, %c0_19, %c0_20] : memref<1x3x384xf32, #tpu.memory_space<vmem>>, vector<1x3x384xf32>
    %25 = vector.shape_cast %24 : vector<1x3x384xf32> to vector<3x384xf32>
    %26 = vector.shape_cast %23 : vector<3x384xf32> to vector<1x3x384xf32>
    tpu.vector_store %arg9[%c0_18, %c0_19, %c0_20], %26 {strides = array<i32>} : memref<1x3x384xf32, #tpu.memory_space<vmem>>, vector<1x3x384xf32>,
    return
  }
  func.func @transform_0(%arg0: i32, %arg1: i32) -> (i32, i32, i32) {
    %c0_i32 = arith.constant 0 : i32
    %c0_i32_0 = arith.constant 0 : i32
    return %arg1, %c0_i32, %arg0 : i32, i32, i32
  }
  func.func @transform_1(%arg0: i32, %arg1: i32) -> (i32, i32) {
    %c0_i32 = arith.constant 0 : i32
    %c0_i32_0 = arith.constant 0 : i32
    %c0_i32_1 = arith.constant 0 : i32
    return %c0_i32, %c0_i32_0 : i32, i32
  }
  func.func @transform_2(%arg0: i32, %arg1: i32) -> (i32, i32) {
    %c0_i32 = arith.constant 0 : i32
    %c0_i32_0 = arith.constant 0 : i32
    %c0_i32_1 = arith.constant 0 : i32
    return %c0_i32, %c0_i32_0 : i32, i32
  }
  func.func @transform_3(%arg0: i32, %arg1: i32) -> (i32, i32) {
    %c0_i32 = arith.constant 0 : i32
    %c0_i32_0 = arith.constant 0 : i32
    %c0_i32_1 = arith.constant 0 : i32
    return %c0_i32, %c0_i32_0 : i32, i32
  }
  func.func @transform_4(%arg0: i32, %arg1: i32) -> (i32, i32) {
    %c0_i32 = arith.constant 0 : i32
    %c0_i32_0 = arith.constant 0 : i32
    %c0_i32_1 = arith.constant 0 : i32
    return %c0_i32, %c0_i32_0 : i32, i32
  }
  func.func @transform_5(%arg0: i32, %arg1: i32) -> (i32, i32) {
    %c0_i32 = arith.constant 0 : i32
    %c0_i32_0 = arith.constant 0 : i32
    %c0_i32_1 = arith.constant 0 : i32
    return %c0_i32, %c0_i32_0 : i32, i32
  }
  func.func @transform_6(%arg0: i32, %arg1: i32) -> (i32, i32) {
    %c0_i32 = arith.constant 0 : i32
    %c0_i32_0 = arith.constant 0 : i32
    %c0_i32_1 = arith.constant 0 : i32
    return %c0_i32, %c0_i32_0 : i32, i32
  }
  func.func @transform_7(%arg0: i32, %arg1: i32) -> (i32, i32, i32) {
    %c0_i32 = arith.constant 0 : i32
    %c0_i32_0 = arith.constant 0 : i32
    return %arg1, %c0_i32, %arg0 : i32, i32, i32
  }
}

</mosaic_0001>

<bundles_post_ra>
// kernel: tpu_custom_call.1
= control target key start
LH: loop header
LB: loop body
LE: loop exit
PB: predicated region body
PF: predicated region fallthrough
CT: control target
= control target key end

     0   :  { %12 = vsyncpa [#allocation3], 0  ;;  %s1142_s0 = inlined_call_operand.hbm [shape: f32[2,48,384], index: 0, kind: input, shape index: {}]   ;;  %s1143_s1 = inlined_call_operand.vmem [shape: bf16[32,48], index: 1, kind: input, shape index: {}]   ;;  %s1144_s2 = inlined_call_operand.vmem [shape: f32[32,1], index: 2, kind: input, shape index: {}]   ;;  %s1145_s3 = inlined_call_operand.vmem [shape: bf16[32,32], index: 3, kind: input, shape index: {}]   ;;  %s1146_s4 = inlined_call_operand.vmem [shape: f32[32,1], index: 4, kind: input, shape index: {}]   ;;  %s1147_s5 = inlined_call_operand.vmem [shape: bf16[3,32], index: 5, kind: input, shape index: {}]   ;;  %s1148_s6 = inlined_call_operand.vmem [shape: f32[3,1], index: 6, kind: input, shape index: {}]   ;;  %s1149_s7 = inlined_call_operand.vmem [shape: f32[2,3,384], index: 7, kind: output, shape index: {}]  }
   0x1   :  { %14 = vsyncpa [#allocation3 + $0x1], 0  ;;  %s983_s24 = smov 0   ;;  %s985_s25 = smov 0  }
   0x2   :  { %s987_s26 = smov 0   ;;  %s989_s27 = smov 0  }
   0x3   :  { %s991_s28 = smov 0   ;;  %s993_s29 = smov 0  }
   0x4 LB: > { %s749_s30 = sadd.s32 4294967295, %s938_s29   ;;  %s29_s8 = sadd.s32 1, %s934_s28  ;;  %s938_s29 = sphi %s993_s29, %s20_s29   ;;  %s934_s28 = sphi %s991_s28, %s1155_s28   ;;  %s930_s27 = sphi %s989_s27, %s1154_s27   ;;  %s926_s26 = sphi %s987_s26, %s1153_s26   ;;  %s922_s25 = sphi %s985_s25, %s1152_s25   ;;  %s918_s24 = sphi %s983_s24, %s1151_s24  }
   0x5   : > { %p30_p0 = scmp.ge.s32.totalorder %s29_s8, 2  ;;  %s41_s9 = sadd.s32 1, %s926_s26 }
   0x6   : > { %p48_p1 = scmp.ne.s32.totalorder %s926_s26, %s922_s25  ;;  %p49_p2 = scmp.eq.s32.totalorder %s938_s29, 0 }
   0x7   : > { %s1157_s8 = smov (%p30_p0, %s29_s8), 0  ;;  %p54_p4 = scmp.ne.s32.totalorder %s922_s25, %s918_s24 }
   0x8   : > { %p50_p3 = por %p49_p2, %p48_p1  ;;  %s36_s10 = ssub.s32 %s934_s28, %s1157_s8 }
   0x9   : > { %p55_p5 = scmp.eq.s32.totalorder %s749_s30, 0  ;;  %p39_p6 = scmp.eq.s32.totalorder %s36_s10, 0 }
   0xa   : > { %p803_p8 = scmp.lt.s32.totalorder %s938_s29, 2  ;;  %s250_s13 = sand.u32 1, %s926_s26  }
   0xb   : > { %p1022_p7 = por %p55_p5, %p54_p4  ;;  %s794_s14 = smul.u32 144, %s934_s28 }
   0xc   : > { %s1028_s12 = scalar_select %p39_p6, %s926_s26, %s41_s9  }
   0xd   : > { %s793_s15 = smul.u32 144, %s250_s13  ;;  %s261_s18 = scalar_lea.hbm %s1142_s0, %s794_s14 }
   0xe   : > { %p800_p9 = pnand %p803_p8, %p50_p3  ;;  %s262_s19 = sshll.u32 %s261_s18, 4  ;;  %s263_s19 = int_to_ptr.hbm [resolvable:$true] %s262_s19 }
   0xf   : > { %s254_s20 = scalar_lea.vmem [#allocation2], %s793_s15  ;;  %s251_s22 = scalar_lea.sflag [#allocation3], %s250_s13 }
  0x10   : > { %s264_s21 = sshll.u32 %s254_s20, 4  ;;  %s940_s23 = smov 384   ;;  %s265_s21 = int_to_ptr.vmem [resolvable:$true] %s264_s21 }
  0x11   : > { %s941_s24 = smov 24   ;;  %p754_p10 = scmp.ge.s32.totalorder %s938_s29, 1 }
  0x12   : > { %802 = dma.hbm_to_vmem [thread:$0]  (!%p800_p9), %s263_s19, 2304, %s265_s21, %s251_s22, %s940_s23, %s940_s23, %s941_s24  }
  0x13   : > { %p272_p11 = scmp.lt.s32.totalorder %s938_s29, 3 }
  0x15   : > { %p273_p12 = pnand %p754_p10, %p272_p11 }
  0x16   : > { %s278_s30 = sand.u32 (!%p273_p12), 1, %s922_s25  }
  0x17   : > { %276 = sbr.rel (%p273_p12) target bundleno = 547 (0x223), region = 48  ;;  %s279_s10 = scalar_lea.sflag (!%p273_p12), [#allocation3], %s278_s30 }
  0x18   : > { %s795_s9 = smul.u32 (!%p273_p12), 144, %s278_s30 }
  0x1a   : > { %s1038_s14 = scalar_lea.vmem (!%p273_p12), [#allocation2], %s795_s9 }
  0x1c   : > { %913 = dma.done.wait (%p1022_p7), %s279_s10, 2304  }
  0x1d   : > { %915 = vsyncadd (%p1022_p7), %s279_s10, 4294964992  ;;  %v942_v0 = vmov 0   ;;  %v342_v1 = vld [vmem:[%s1038_s14 + $0x60] sm:$0xff]  ;;  %v345_v2 = vld [vmem:[%s1038_s14 + $0x78] sm:$0xff]  ;;  %vm395_vm0 = vcmask 392192   ;;  %vm515_vm1 = vcmask 261120  }
  0x1e   : > { %856 = vset.pattern.permute.xlu1 %v942_v0  ;;  %855 = vset.pattern.permute.xlu0 %v942_v0  ;;  %v343_v3 = vld [vmem:[%s1038_s14 + $0x68] sm:$0xff]  ;;  %v354_v4 = vpack.c.bf16 %v345_v2, %v342_v1  ;;  %v346_v5 = vld [vmem:[%s1038_s14 + $0x80] sm:$0xff]  ;;  %v344_v6 = vld [vmem:[%s1038_s14 + $0x70] sm:$0xff]  ;;  %p320_p13 = scmp.lt.s32.totalorder %s930_s27, 1  ;;  %vm649_vm2 = vcmask 1043456  }
  0x1f   : > { %857 = vset.pattern.permute.xlu2 %v942_v0  ;;  %v347_v7 = vld [vmem:[%s1038_s14 + $0x88] sm:$0xff]  ;;  %v355_v8 = vpack.c.bf16 %v346_v5, %v343_v3  ;;  %v336_v10 = vld [vmem:[%s1038_s14 + $0x30] sm:$0xff]  ;;  %v337_v12 = vld [vmem:[%s1038_s14 + $0x38] sm:$0xff] }
  0x20   : > { %v356_v9 = vpack.c.bf16 %v347_v7, %v344_v6  ;;  %v339_v11 = vld [vmem:[%s1038_s14 + $0x48] sm:$0xff]  ;;  %407 = vmatpush.bf16.msra.mxu0 %v354_v4  ;;  %v340_v14 = vld [vmem:[%s1038_s14 + $0x50] sm:$0xff]  ;;  %v338_v15 = vld [vmem:[%s1038_s14 + $0x40] sm:$0xff]  ;;  %s1159_s27 = smov (!%p320_p13, %s930_s27), 1 }
  0x21   : > { %v351_v13 = vpack.c.bf16 %v339_v11, %v336_v10  ;;  %v341_v16 = vld [vmem:[%s1038_s14 + $0x58] sm:$0xff]  ;;  %426 = vmatpush.bf16.msra.mxu1 %v355_v8  ;;  %v352_v17 = vpack.c.bf16 %v340_v14, %v337_v12  ;;  %v330_v19 = vld [vmem:[%s1038_s14] sm:$0xff]  ;;  %v331_v21 = vld [vmem:[%s1038_s14 + $0x8] sm:$0xff]  ;;  %s796_s30 = smul.u32 12, %s1159_s27 }
  0x22   : > { %445 = vmatpush.bf16.msra.mxu2 %v356_v9  ;;  %v353_v18 = vpack.c.bf16 %v341_v16, %v338_v15  ;;  %v333_v20 = vld [vmem:[%s1038_s14 + $0x18] sm:$0xff]  ;;  %v334_v22 = vld [vmem:[%s1038_s14 + $0x20] sm:$0xff]  ;;  %v332_v23 = vld [vmem:[%s1038_s14 + $0x10] sm:$0xff] }
  0x23   : > { %v335_v24 = vld [vmem:[%s1038_s14 + $0x28] sm:$0xff]  ;;  %v363_v25 = vld [vmem:[%s1144_s2 + $0x10] sm:$0xff]  ;;  %v361_v26 = vld [vmem:[%s1144_s2] sm:$0xff]  ;;  %v348_v27 = vpack.c.bf16 %v333_v20, %v330_v19  ;;  %v349_v28 = vpack.c.bf16 %v334_v22, %v331_v21  ;;  %s327_s14 = scalar_lea.vmem %s1149_s7, %s796_s30 }
  0x24   : > { %408 = vmatpush.bf16.msra.mxu0 %v351_v13  ;;  %377 = vperm.xlu0 %855, %v363_v25   ;;  %v350_v29 = vpack.c.bf16 %v335_v24, %v332_v23  ;;  %v789_v30 = vld [vmem:[%s1143_s1] sm:$0xff]  ;;  %v364_v31 = vld [vmem:[%s1144_s2 + $0x18] sm:$0xff]  ;;  %v362_v32 = vld [vmem:[%s1144_s2 + $0x8] sm:$0xff] }
  0x25   : > { %427 = vmatpush.bf16.msra.mxu1 %v352_v17  ;;  %367 = vperm.xlu1 %856, %v361_v26   ;;  %v481_v33 = vld [vmem:[%s1146_s4] sm:$0xff]  ;;  %v482_v34 = vld [vmem:[%s1146_s4 + $0x8] sm:$0xff]  ;;  %v483_v20 = vld [vmem:[%s1146_s4 + $0x10] sm:$0xff] }
  0x26   : > { %446 = vmatpush.bf16.msra.mxu2 %v353_v18  ;;  %v790_v35 = vld [vmem:[%s1143_s1 + $0x8] sm:$0xff]  ;;  %v791_v13 = vld [vmem:[%s1145_s3] sm:$0xff]  ;;  %497 = vperm.xlu2 %857, %v483_v20   ;;  %v484_v21 = vld [vmem:[%s1146_s4 + $0x18] sm:$0xff] }
  0x27   : > { %v792_v19 = vld [vmem:[%s1145_s3 + $0x8] sm:$0xff]  ;;  %v598_v22 = vld [vmem:[%s1148_s6] sm:$0x7] }
  0x28   : > { %409 = vmatpush.bf16.msra.mxu0 %v348_v27 }
  0x29   : > { %428 = vmatpush.bf16.msra.mxu1 %v349_v28 }
  0x2a   : > { %447 = vmatpush.bf16.msra.mxu2 %v350_v29 }
  0x2b   : > { %764 = vmatmul.msk.bf16.vlgmr.msra.gmra.mxu0 %vm395_vm0, %v789_v30 }
  0x2c   : > { %766 = vmatmul.msk.bf16.vlgmr.msra.gmra.mxu1 %vm395_vm0, %v789_v30  ;;  %382 = vperm.xlu0 %855, %v364_v31  }
  0x2d   : > { %768 = vmatmul.msk.bf16.vlgmr.msra.gmra.mxu2 %vm395_vm0, %v789_v30  ;;  %372 = vperm.xlu1 %856, %v362_v32  }
  0x2e   : > { %502 = vperm.xlu2 %857, %v484_v21  }
  0x34   : > { %487 = vperm.xlu0 %855, %v481_v33  }
  0x35   : > { %492 = vperm.xlu1 %856, %v482_v34  }
  0x36   : > { %601 = vperm.xlu2 %857, %v598_v22  }
  0x3b   : > { %765 = vmatmul.msk.bf16.gmra.mxu0 %vm395_vm0, %v790_v35 }
  0x3c   : > { %767 = vmatmul.msk.bf16.gmra.mxu1 %vm395_vm0, %v790_v35 }
  0x3d   : > { %769 = vmatmul.msk.bf16.gmra.mxu2 %vm395_vm0, %v790_v35 }
  0x80   : > { %v498_v27 = vpop.permute.xlu2 %497 }
  0x88   : > { %v503_v30 = vpop.permute.xlu2 %502 }
  0x96   : > { %v378_v42 = vpop.permute.xlu0 %377 }
  0x97   : > { %v368_v41 = vpop.permute.xlu1 %367 }
  0x9e   : > { %v383_v49 = vpop.permute.xlu0 %382 }
  0x9f   : > { %v373_v46 = vpop.permute.xlu1 %372 }
  0xa7   : > { %v493_v32 = vpop.permute.xlu1 %492 }
  0xa8   : > { %v411_v36 = vpop.f32.mrf.mxu0 }
  0xa9   : > { %v430_v37 = vpop.f32.mrf.mxu1  ;;  %v412_v55 = vadd.f32 %v411_v36, %v368_v41 }
  0xaa   : > { %v431_v59 = vadd.f32 %v430_v37, %v368_v41 }
  0xab   : > { %v459_v1 = vmax.f32 %v412_v55, 0.0 }
  0xac   : > { %v460_v7 = vmax.f32 %v431_v59, 0.0 }
  0xb0   : > { %v449_v38 = vpop.f32.mrf.mxu2  ;;  %v413_v39 = vpop.f32.mrf.mxu0 }
  0xb1   : > { %v432_v40 = vpop.f32.mrf.mxu1  ;;  %v414_v51 = vadd.f32 %v413_v39, %v373_v46  ;;  %v450_v3 = vadd.f32 %v449_v38, %v368_v41  ;;  %v488_v38 = vpop.permute.xlu0 %487 }
  0xb2   : > { %v433_v62 = vadd.f32 %v432_v40, %v373_v46 }
  0xb3   : > { %v462_v60 = vmax.f32 %v414_v51, 0.0  ;;  %v461_v14 = vmax.f32 %v450_v3, 0.0 }
  0xb4   : > { %v463_v9 = vmax.f32 %v433_v62, 0.0 }
  0xb5   : > { %v471_v8 = vpack.c.bf16 %v462_v60, %v459_v1 }
  0xb6   : > { %v472_v17 = vpack.c.bf16 %v463_v9, %v460_v7 }
  0xb8   : > { %v451_v43 = vpop.f32.mrf.mxu2  ;;  %v416_v44 = vpop.f32.mrf.mxu0 }
  0xb9   : > { %v435_v45 = vpop.f32.mrf.mxu1  ;;  %v417_v47 = vadd.f32 %v416_v44, %v378_v42  ;;  %v452_v4 = vadd.f32 %v451_v43, %v373_v46 }
  0xba   : > { %v436_v58 = vadd.f32 %v435_v45, %v378_v42 }
  0xbb   : > { %v465_v56 = vmax.f32 %v417_v47, 0.0  ;;  %v464_v15 = vmax.f32 %v452_v4, 0.0 }
  0xbc   : > { %v466_v5 = vmax.f32 %v436_v58, 0.0 }
  0xbd   : > { %v473_v18 = vpack.c.bf16 %v464_v15, %v461_v14 }
  0xc0   : > { %v454_v48 = vpop.f32.mrf.mxu2  ;;  %v418_v50 = vpop.f32.mrf.mxu0 }
  0xc1   : > { %v419_v52 = vadd.f32 %v418_v50, %v383_v49  ;;  %v437_v53 = vpop.f32.mrf.mxu1  ;;  %v455_v63 = vadd.f32 %v454_v48, %v378_v42 }
  0xc2   : > { %v438_v54 = vadd.f32 %v437_v53, %v383_v49 }
  0xc3   : > { %v468_v57 = vmax.f32 %v419_v52, 0.0  ;;  %v467_v10 = vmax.f32 %v455_v63, 0.0 }
  0xc4   : > { %v469_v0 = vmax.f32 %v438_v54, 0.0  ;;  %v597_v54 = vld [vmem:[%s1147_s5] sm:$0x3] }
  0xc5   : > { %v474_v61 = vpack.c.bf16 %v468_v57, %v465_v56 }
  0xc6   : > { %v475_v12 = vpack.c.bf16 %v469_v0, %v466_v5 }
  0xc7   : > { %528 = vmatpush.bf16.msra.mxu3 %v474_v61 }
  0xc8   : > { %v456_v2 = vpop.f32.mrf.mxu2 }
  0xc9   : > { %v457_v6 = vadd.f32 %v456_v2, %v383_v49 }
  0xcb   : > { %v470_v11 = vmax.f32 %v457_v6, 0.0  ;;  %529 = vmatpush.bf16.msra.mxu3 %v471_v8  ;;  %v602_v8 = vpop.permute.xlu2 %601 }
  0xcd   : > { %v476_v16 = vpack.c.bf16 %v470_v11, %v467_v10 }
  0xce   : > { %778 = vmatmul.msk.bf16.vlgmr.msra.gmra.mxu3 %vm515_vm1, %v791_v13 }
  0xcf   : > { %547 = vmatpush.bf16.msrb.mxu3 %v475_v12  ;;  %566 = vmatpush.bf16.msrb.mxu0 %v476_v16 }
  0xd3   : > { %548 = vmatpush.bf16.msrb.mxu3 %v472_v17  ;;  %567 = vmatpush.bf16.msrb.mxu0 %v473_v18 }
  0xd6   : > { %782 = vmatmul.msk.bf16.vlgmr.msrb.gmra.mxu0 %vm515_vm1, %v791_v13 }
  0xde   : > { %779 = vmatmul.msk.bf16.gmra.mxu3 %vm515_vm1, %v792_v19 }
  0xe6   : > { %783 = vmatmul.msk.bf16.gmra.mxu0 %vm515_vm1, %v792_v19 }
  0xee   : > { %780 = vmatmul.msk.bf16.vlgmr.msrb.gmra.mxu3 %vm515_vm1, %v791_v13 }
  0xfe   : > { %781 = vmatmul.msk.bf16.gmra.mxu3 %vm515_vm1, %v792_v19 }
 0x151   : > { %v531_v23 = vpop.f32.mrf.mxu3 }
 0x152   : > { %v532_v40 = vadd.f32 %v531_v23, %v488_v38 }
 0x153   : > { %v569_v24 = vpop.f32.mrf.mxu0 }
 0x154   : > { %v579_v48 = vmax.f32 %v532_v40, 0.0  ;;  %v570_v49 = vadd.f32 %v569_v24, %v488_v38 }
 0x156   : > { %v581_v55 = vmax.f32 %v570_v49, 0.0 }
 0x159   : > { %v533_v25 = vpop.f32.mrf.mxu3 }
 0x15a   : > { %v534_v35 = vadd.f32 %v533_v25, %v493_v32 }
 0x15b   : > { %v571_v26 = vpop.f32.mrf.mxu0 }
 0x15c   : > { %v582_v45 = vmax.f32 %v534_v35, 0.0  ;;  %v572_v47 = vadd.f32 %v571_v26, %v493_v32 }
 0x15e   : > { %v591_v52 = vpack.c.bf16 %v582_v45, %v579_v48  ;;  %v584_v53 = vmax.f32 %v572_v47, 0.0 }
 0x160   : > { %v593_v56 = vpack.c.bf16 %v584_v53, %v581_v55 }
 0x161   : > { %v536_v28 = vpop.f32.mrf.mxu3 }
 0x162   : > { %v537_v31 = vadd.f32 %v536_v28, %v498_v27 }
 0x163   : > { %v574_v29 = vpop.f32.mrf.mxu0 }
 0x164   : > { %v575_v33 = vadd.f32 %v574_v29, %v498_v27  ;;  %v585_v41 = vmax.f32 %v537_v31, 0.0 }
 0x166   : > { %v587_v43 = vmax.f32 %v575_v33, 0.0 }
 0x169   : > { %v538_v34 = vpop.f32.mrf.mxu3 }
 0x16a   : > { %v539_v36 = vadd.f32 %v538_v34, %v503_v30 }
 0x16b   : > { %v576_v37 = vpop.f32.mrf.mxu0 }
 0x16c   : > { %v577_v39 = vadd.f32 %v576_v37, %v503_v30  ;;  %v588_v42 = vmax.f32 %v539_v36, 0.0 }
 0x16e   : > { %v590_v44 = vmax.f32 %v577_v39, 0.0  ;;  %v594_v46 = vpack.c.bf16 %v588_v42, %v585_v41 }
 0x170   : > { %613 = vmatpush.bf16.msrb.mxu1 %v594_v46  ;;  %v596_v50 = vpack.c.bf16 %v590_v44, %v587_v43 }
 0x171   : > { %v550_v51 = vpop.f32.mrf.mxu3 }
 0x172   : > { %v551_v63 = vadd.f32 %v550_v51, %v488_v38 }
 0x174   : > { %614 = vmatpush.bf16.msrb.mxu1 %v591_v52  ;;  %v580_v4 = vmax.f32 %v551_v63, 0.0 }
 0x177   : > { %784 = vmatmul.msk.bf16.vlgmr.msrb.gmra.mxu1 %vm515_vm1, %v597_v54 }
 0x178   : > { %639 = vmatpush.bf16.msra.mxu1 %v596_v50 }
 0x179   : > { %v552_v57 = vpop.f32.mrf.mxu3 }
 0x17a   : > { %v553_v61 = vadd.f32 %v552_v57, %v493_v32 }
 0x17c   : > { %640 = vmatpush.bf16.msra.mxu1 %v593_v56  ;;  %v583_v2 = vmax.f32 %v553_v61, 0.0 }
 0x17e   : > { %v592_v5 = vpack.c.bf16 %v583_v2, %v580_v4 }
 0x181   : > { %v555_v58 = vpop.f32.mrf.mxu3 }
 0x182   : > { %v556_v59 = vadd.f32 %v555_v58, %v498_v27 }
 0x184   : > { %v586_v0 = vmax.f32 %v556_v59, 0.0 }
 0x187   : > { %786 = vmatmul.msk.bf16.vlgmr.msra.gmra.mxu1 %vm515_vm1, %v597_v54 }
 0x189   : > { %v557_v60 = vpop.f32.mrf.mxu3 }
 0x18a   : > { %v558_v62 = vadd.f32 %v557_v60, %v503_v30 }
 0x18c   : > { %v589_v1 = vmax.f32 %v558_v62, 0.0 }
 0x18e   : > { %v595_v3 = vpack.c.bf16 %v589_v1, %v586_v0 }
 0x190   : > { %626 = vmatpush.bf16.msrb.mxu2 %v595_v3 }
 0x194   : > { %627 = vmatpush.bf16.msrb.mxu2 %v592_v5 }
 0x197   : > { %785 = vmatmul.msk.bf16.vlgmr.msrb.gmra.mxu2 %vm515_vm1, %v597_v54 }
 0x1f4   : > { %v616_v6 = vpop.f32.mrf.mxu1 }
 0x1f5   : > { %v617_v14 = vadd.f32 %v616_v6, %v602_v8 }
 0x1fc   : > { %v618_v7 = vpop.f32.mrf.mxu1 }
 0x204   : > { %v642_v9 = vpop.f32.mrf.mxu1 }
 0x205   : > { %v643_v10 = vadd.f32 %v642_v9, %v602_v8 }
 0x207   : > { %653 = vst [vmem:[%s327_s14 + $0x8] sm:$0x7] %v643_v10 }
 0x20c   : > { %v644_v11 = vpop.f32.mrf.mxu1 }
 0x21a   : > { %v629_v12 = vpop.f32.mrf.mxu2 }
 0x21b   : > { %v630_v13 = vadd.f32 %v629_v12, %v602_v8 }
 0x21d   : > { %v648_v15 = vrot.slane %v630_v13, 4 }
 0x21f   : > { %v650_v16 = vsel %vm649_vm2, %v617_v14, %v648_v15 }
 0x220   : > { %652 = vst [vmem:[%s327_s14] sm:$0x77] %v650_v16 }
 0x222   : > { %v631_v17 = vpop.f32.mrf.mxu2 }
 0x223 PF: > { %s20_s29 = sadd.s32 1, %s938_s29   ;;  %s1151_s24 = smov %s922_s25 }
 0x224   : > { %p17_p0 = scmp.ge.s32.totalorder %s20_s29, 4   ;;  %s1152_s25 = smov %s926_s26 }
 0x225   : > { %s1153_s26 = smov %s1028_s12  ;;  %s1154_s27 = smov %s934_s28 }
 0x226   : > { %s1155_s28 = smov %s1157_s8  ;;  %19 = sbr.rel (!%p17_p0) target bundleno = 4 (0x4), region = 88 }
 0x22b   :  { %684 = vsyncpa [#allocation3], 1 }
 0x22c   :  { %686 = vsyncpa [#allocation3 + $0x1], 1 }

</bundles_post_ra>
